<compile_context>
chip_gen: v5e
topology: v5e:2x2
jax: 0.10.0
libtpu: 0.0.40
codegen_flags: <defaults>
</compile_context>

<pallas_src>
import functools

import jax
import jax.numpy as jnp
from jax import lax
from jax.experimental import pallas as pl
from jax.experimental.pallas import tpu as pltpu

# Safe on v5e/v6e/v7x.  TODO(synk): raise toward 64-96 MiB on v5e/v6e for big shapes.
_VMEM_LIMIT = 32 * 1024 * 1024


# --------------------------------------------------------------------------
# helpers
# --------------------------------------------------------------------------

def _pick_tile(dim, target, granule):
    """Largest tile <= target that divides `dim` and is a multiple of
    `granule`; falls back to the full dim (small / odd shapes)."""
    if dim <= target:
        return dim
    t = (target // granule) * granule
    while t >= granule:
        if dim % t == 0:
            return t
        t -= granule
    return dim  # TODO(synk): pad awkward (prime-ish) dims instead of one huge block


def _ln_core(h, g, b, eps):
    mu = jnp.mean(h, axis=-1, keepdims=True)
    var = jnp.mean(jnp.square(h - mu), axis=-1, keepdims=True)
    return (h - mu) * lax.rsqrt(var + eps) * g + b


# --------------------------------------------------------------------------
# tiled matmul:  y = x @ wt   (wt stored as (in, out), bf16 MXU operands)
# --------------------------------------------------------------------------

def _matmul_kernel(x_ref, w_ref, o_ref, acc_ref):
    @pl.when(pl.program_id(2) == 0)
    def _init():
        acc_ref[...] = jnp.zeros_like(acc_ref)

    acc_ref[...] += jnp.dot(x_ref[...].astype(jnp.bfloat16),
                            w_ref[...].astype(jnp.bfloat16),
                            preferred_element_type=jnp.float32)

    @pl.when(pl.program_id(2) == pl.num_programs(2) - 1)
    def _fin():
        o_ref[...] = acc_ref[...].astype(o_ref.dtype)


def linear(x, wt, *, tm=512, tn=512, tk=512):
    """x: (M, K) f32; wt: (K, N) bf16 pre-transposed weight.  Returns (M, N) f32."""
    M, K = x.shape
    K2, N = wt.shape
    assert K == K2
    tm = _pick_tile(M, tm, 8)
    tn = _pick_tile(N, tn, 128)
    tk = _pick_tile(K, tk, 128)
    return pl.pallas_call(
        _matmul_kernel,
        out_shape=jax.ShapeDtypeStruct((M, N), x.dtype),
        grid=(M // tm, N // tn, K // tk),
        in_specs=[
            pl.BlockSpec((tm, tk), lambda i, j, k: (i, k)),
            pl.BlockSpec((tk, tn), lambda i, j, k: (k, j)),
        ],
        out_specs=pl.BlockSpec((tm, tn), lambda i, j, k: (i, j)),
        scratch_shapes=[pltpu.VMEM((tm, tn), jnp.float32)],
        compiler_params=pltpu.CompilerParams(
            dimension_semantics=("parallel", "parallel", "arbitrary"),
            vmem_limit_bytes=_VMEM_LIMIT),
    )(x, wt)


# --------------------------------------------------------------------------
# output projection with fused residual-add + LayerNorm in the finalize step
# --------------------------------------------------------------------------

def _matmul_res_ln_kernel(x_ref, w_ref, res_ref, g_ref, b_ref, o_ref, acc_ref,
                          *, eps):
    @pl.when(pl.program_id(1) == 0)
    def _init():
        acc_ref[...] = jnp.zeros_like(acc_ref)

    acc_ref[...] += jnp.dot(x_ref[...].astype(jnp.bfloat16),
                            w_ref[...].astype(jnp.bfloat16),
                            preferred_element_type=jnp.float32)

    @pl.when(pl.program_id(1) == pl.num_programs(1) - 1)
    def _fin():
        h = acc_ref[...] + res_ref[...]
        o_ref[...] = _ln_core(h, g_ref[...], b_ref[...], eps).astype(o_ref.dtype)


def linear_residual_layernorm(x, wt, residual, gamma, beta, *, eps=1e-5,
                              tm=512, tk=512):
    """LayerNorm(residual + x @ wt) with the add+LN fused into the GEMM
    finalize (N = d_model is kept un-tiled so every tile owns full rows)."""
    M, K = x.shape
    K2, N = wt.shape
    assert K == K2 and residual.shape == (M, N)
    tm = _pick_tile(M, tm, 8)
    tk = _pick_tile(K, tk, 128)
    kernel = functools.partial(_matmul_res_ln_kernel, eps=eps)
    return pl.pallas_call(
        kernel,
        out_shape=jax.ShapeDtypeStruct((M, N), x.dtype),
        grid=(M // tm, K // tk),
        in_specs=[
            pl.BlockSpec((tm, tk), lambda i, k: (i, k)),
            pl.BlockSpec((tk, N), lambda i, k: (k, 0)),
            pl.BlockSpec((tm, N), lambda i, k: (i, 0)),
            pl.BlockSpec((1, N), lambda i, k: (0, 0)),
            pl.BlockSpec((1, N), lambda i, k: (0, 0)),
        ],
        out_specs=pl.BlockSpec((tm, N), lambda i, k: (i, 0)),
        scratch_shapes=[pltpu.VMEM((tm, N), jnp.float32)],
        compiler_params=pltpu.CompilerParams(
            dimension_semantics=("parallel", "arbitrary"),
            vmem_limit_bytes=_VMEM_LIMIT),
    )(x, wt, residual, gamma.reshape(1, N), beta.reshape(1, N))


# --------------------------------------------------------------------------
# standalone LayerNorm (pre_lnorm path)
# --------------------------------------------------------------------------

def _layernorm_kernel(x_ref, g_ref, b_ref, o_ref, *, eps):
    o_ref[...] = _ln_core(x_ref[...], g_ref[...], b_ref[...], eps).astype(
        o_ref.dtype)


def layernorm(x, gamma, beta, eps=1e-5, block_m=512):
    M, D = x.shape
    tm = _pick_tile(M, block_m, 8)
    kernel = functools.partial(_layernorm_kernel, eps=eps)
    return pl.pallas_call(
        kernel,
        out_shape=jax.ShapeDtypeStruct((M, D), x.dtype),
        grid=(M // tm,),
        in_specs=[
            pl.BlockSpec((tm, D), lambda i: (i, 0)),
            pl.BlockSpec((1, D), lambda i: (0, 0)),
            pl.BlockSpec((1, D), lambda i: (0, 0)),
        ],
        out_specs=pl.BlockSpec((tm, D), lambda i: (i, 0)),
        compiler_params=pltpu.CompilerParams(
            dimension_semantics=("parallel",),
            vmem_limit_bytes=_VMEM_LIMIT),
    )(x, gamma.reshape(1, D), beta.reshape(1, D))


# --------------------------------------------------------------------------
# relative multi-head attention core (grid over batch, lane-dense blocks)
# --------------------------------------------------------------------------

def _rel_attn_kernel(q_ref, kv_ref, rk_ref, bias_ref, nmask_ref, o_ref,
                     ac_scr, bd_scr, *, scale, n_head, d_head):
    qlen, nd = q_ref.shape
    klen = kv_ref.shape[0]
    n, d = n_head, d_head
    assert nd == n * d and kv_ref.shape[1] == 2 * nd

    # lane-dense loads (last dim = n*d), single bf16 cast each for the MXU
    qb = q_ref[...].astype(jnp.bfloat16)           # (qlen, n*d)
    kv = kv_ref[...]                               # (klen, 2*n*d)
    kb = kv[:, :nd].astype(jnp.bfloat16)           # (klen, n*d)
    vb = kv[:, nd:].astype(jnp.bfloat16)           # (klen, n*d)
    rkb = rk_ref[...].astype(jnp.bfloat16)         # (klen, n*d)
    biasb = bias_ref[...].astype(jnp.bfloat16)     # (2, n*d): [r_w_bias ; r_r_bias]

    dn = (((1,), (1,)), ((), ()))                  # contract d_head, no batch dims
    for h in range(n):                             # static unroll: MXU pushes only
        sl = slice(h * d, (h + 1) * d)
        # fused score matmul: q_h @ [k_h ; rk_h]^T  -> (qlen, 2*klen)
        rhs = jnp.concatenate([kb[:, sl], rkb[:, sl]], axis=0)     # (2*klen, d)
        sc = lax.dot_general(qb[:, sl], rhs, dn,
                             preferred_element_type=jnp.float32)
        # hoisted bias rows:  rwb_h @ k_h^T  and  rrb_h @ rk_h^T   (tiny dot)
        scb = lax.dot_general(biasb[:, sl], rhs, dn,
                              preferred_element_type=jnp.float32)  # (2, 2*klen)
        ac_scr[h] = sc[:, :klen] + scb[0:1, :klen]   # AC = q·kᵀ + rwb·kᵀ
        bd_scr[h] = sc[:, klen:] + scb[1:2, klen:]   # BD = q·rkᵀ + rrb·rkᵀ

    # Relative shift on the head-stacked BD: row i rotated LEFT by (qlen-1-i),
    # built from log2(qlen) uniform lane rotations (pltpu.roll, XLU slot) +
    # per-row bit-decomposed selects.  Wrapped entries only land in positions
    # removed by the standard causal+memory attn_mask.
    bd = bd_scr[...].reshape(n * qlen, klen)
    rowq = lax.broadcasted_iota(jnp.int32, (n, qlen, klen), 1).reshape(
        n * qlen, klen)
    lshift = (qlen - 1) - rowq
    step = 1
    while step < qlen:
        rolled = pltpu.roll(bd, klen - step, axis=1)   # uniform left-rotate by step
        bd = jnp.where((lshift & step) != 0, rolled, bd)
        step <<= 1

    # head-batched mask add + softmax (one pass over all heads)
    s = (ac_scr[...] + bd.reshape(n, qlen, klen)) * scale \
        + nmask_ref[...][None, :, :]
    m = jnp.max(s, axis=-1, keepdims=True)
    p = jnp.exp(s - m)
    denom = jnp.sum(p, axis=-1, keepdims=True)
    prob = (p * pl.reciprocal(denom, approx=True)).astype(jnp.bfloat16)

    # per-head PV written straight into lane-contiguous output slices
    for h in range(n):
        sl = slice(h * d, (h + 1) * d)
        pv = jnp.dot(prob[h], vb[:, sl], preferred_element_type=jnp.float32)
        o_ref[:, sl] = pv.astype(o_ref.dtype)


def rel_attention_core(q, kv, rk, bias2, nmask, scale, n_head, d_head):
    """q: (qlen, bsz, n*d); kv: (klen, bsz, 2*n*d) ([K | V] lanes);
    rk: (klen, n*d); bias2: (2, n*d) = [r_w_bias; r_r_bias];
    nmask: (qlen, klen) additive mask (0 or -1e30).
    Returns (qlen, bsz, n*d)."""
    qlen, bsz, nd = q.shape
    klen = kv.shape[0]
    kernel = functools.partial(_rel_attn_kernel, scale=scale,
                               n_head=n_head, d_head=d_head)
    # TODO(synk): for long klen on v7x (64 MiB VMEM), tile klen with a
    # flash-style online softmax instead of loading the whole KV per batch.
    # TODO(synk): for bsz == 1 on v7x add a second parallel grid axis
    # (q-tile or head-group) so both TensorCores are used.
    return pl.pallas_call(
        kernel,
        out_shape=jax.ShapeDtypeStruct((qlen, bsz, nd), q.dtype),
        grid=(bsz,),
        in_specs=[
            pl.BlockSpec((qlen, None, nd), lambda b: (0, b, 0)),
            pl.BlockSpec((klen, None, 2 * nd), lambda b: (0, b, 0)),
            pl.BlockSpec((klen, nd), lambda b: (0, 0)),
            pl.BlockSpec((2, nd), lambda b: (0, 0)),
            pl.BlockSpec((qlen, klen), lambda b: (0, 0)),
        ],
        out_specs=pl.BlockSpec((qlen, None, nd), lambda b: (0, b, 0)),
        scratch_shapes=[pltpu.VMEM((n_head, qlen, klen), jnp.float32),
                        pltpu.VMEM((n_head, qlen, klen), jnp.float32)],
        compiler_params=pltpu.CompilerParams(
            dimension_semantics=("parallel",),
            vmem_limit_bytes=_VMEM_LIMIT),
    )(q, kv, rk, bias2, nmask)


# --------------------------------------------------------------------------
# Module wrapper (glue in plain JAX, hot path in the Pallas kernels above)
# --------------------------------------------------------------------------

class RelPartialLearnableMultiHeadAttnPallas:
    def __init__(self, n_head, d_model, d_head, dropout=0.0, dropatt=0.0,
                 pre_lnorm=False, key=None):
        self.n_head = n_head
        self.d_model = d_model
        self.d_head = d_head
        self.scale = 1.0 / d_head ** 0.5
        self.pre_lnorm = pre_lnorm
        # dropout / dropatt are identity at eval (rates unused here)

        k1, k2, k3 = jax.random.split(key, 3)
        std = 0.02
        nd = n_head * d_head
        # weights pre-transposed to (in, out) and stored bf16 for the MXU
        self.qkv_wt = (std * jax.random.normal(
            k1, (d_model, 3 * nd), jnp.float32)).astype(jnp.bfloat16)
        self.o_wt = (std * jax.random.normal(
            k2, (nd, d_model), jnp.float32)).astype(jnp.bfloat16)
        self.r_wt = (std * jax.random.normal(
            k3, (d_model, nd), jnp.float32)).astype(jnp.bfloat16)
        # split views: Q part only needed over the last qlen rows
        self.q_wt = self.qkv_wt[:, :nd]
        self.kv_wt = self.qkv_wt[:, nd:]
        self.ln_g = jnp.ones((d_model,), jnp.float32)
        self.ln_b = jnp.zeros((d_model,), jnp.float32)

    def __call__(self, w, r, r_w_bias, r_r_bias, attn_mask=None, mems=None):
        qlen, bsz, d_model = w.shape
        rlen = r.shape[0]
        n, d = self.n_head, self.d_head
        nd = n * d

        cat = w if mems is None else jnp.concatenate([mems, w], axis=0)
        klen = cat.shape[0]
        assert rlen == klen, "this kernel assumes rlen == klen"

        cat_2d = cat.reshape(klen * bsz, d_model)
        if self.pre_lnorm:
            # TODO(synk): fuse the pre-LN into the K/V GEMM prologue.
            cat_2d = layernorm(cat_2d, self.ln_g, self.ln_b)

        # K/V projection over the full (mems + w) sequence; Q only over the
        # last qlen rows (no wasted Q FLOPs for the memory rows).
        kv = linear(cat_2d, self.kv_wt).reshape(klen, bsz, 2 * nd)
        q_in = cat_2d.reshape(klen, bsz, d_model)[-qlen:]
        q = linear(q_in.reshape(qlen * bsz, d_model),
                   self.q_wt).reshape(qlen, bsz, nd)

        # relative-position key projection
        rk = linear(r.reshape(rlen, d_model), self.r_wt)      # (rlen, n*d)

        if attn_mask is None:
            # TODO(synk): with attn_mask=None the wrapped rel-shift entries are
            # not reproduced bit-exactly (they are masked in the standard
            # Transformer-XL causal+memory use case).
            nmask = jnp.zeros((qlen, klen), jnp.float32)
        else:
            assert attn_mask.ndim == 2  # TODO(synk): 3-D per-batch masks
            nmask = attn_mask.astype(jnp.float32) * (-1e30)

        bias2 = jnp.concatenate([r_w_bias.reshape(1, nd),
                                 r_r_bias.reshape(1, nd)], axis=0)

        # (qlen, bsz, n*d) — emitted directly in output-projection layout
        attn_vec = rel_attention_core(q, kv, rk, bias2, nmask, self.scale,
                                      n, d)
        attn_vec_2d = attn_vec.reshape(qlen * bsz, nd)

        if self.pre_lnorm:
            attn_out = linear(attn_vec_2d, self.o_wt)
            return w + attn_out.reshape(qlen, bsz, d_model)

        # output projection with fused residual add + LayerNorm
        out = linear_residual_layernorm(attn_vec_2d, self.o_wt,
                                        w.reshape(qlen * bsz, d_model),
                                        self.ln_g, self.ln_b)
        return out.reshape(qlen, bsz, d_model)


# --------------------------------------------------------------------------
# Pure-JAX reference (mirrors the PyTorch math, incl. exact _rel_shift)
# --------------------------------------------------------------------------

def _rel_shift_ref(x):
    q, k = x.shape[0], x.shape[1]
    zero_pad = jnp.zeros((q, 1) + x.shape[2:], x.dtype)
    x_padded = jnp.concatenate([zero_pad, x], axis=1)
    x_padded = x_padded.reshape((k + 1, q) + x.shape[2:])
    return x_padded[1:].reshape(x.shape)


def reference_forward(m, w, r, r_w_bias, r_r_bias, attn_mask, mems):
    qlen, bsz, d_model = w.shape
    rlen = r.shape[0]
    n, d = m.n_head, m.d_head
    cat = jnp.concatenate([mems, w], 0) if mems is not None else w
    klen = cat.shape[0]
    qkv_wt = m.qkv_wt.astype(jnp.float32)
    r_wt = m.r_wt.astype(jnp.float32)
    o_wt = m.o_wt.astype(jnp.float32)
    w_heads = cat @ qkv_wt
    r_head_k = (r.reshape(rlen, d_model) @ r_wt).reshape(rlen, n, d)
    w_head_q, w_head_k, w_head_v = jnp.split(w_heads, 3, axis=-1)
    w_head_q = w_head_q[-qlen:].reshape(qlen, bsz, n, d)
    w_head_k = w_head_k.reshape(klen, bsz, n, d)
    w_head_v = w_head_v.reshape(klen, bsz, n, d)
    AC = jnp.einsum('ibnd,jbnd->ijbn', w_head_q + r_w_bias, w_head_k)
    BD = jnp.einsum('ibnd,jnd->ijbn', w_head_q + r_r_bias, r_head_k)
    BD = _rel_shift_ref(BD)
    score = (AC + BD) * m.scale
    if attn_mask is not None:
        score = jnp.where(attn_mask[:, :, None, None] > 0, -1e30, score)
    prob = jax.nn.softmax(score, axis=1)
    attn_vec = jnp.einsum('ijbn,jbnd->ibnd', prob, w_head_v)
    attn_out = attn_vec.reshape(qlen, bsz, n * d) @ o_wt
    h = w + attn_out
    mu = h.mean(-1, keepdims=True)
    var = ((h - mu) ** 2).mean(-1, keepdims=True)
    return (h - mu) / jnp.sqrt(var + 1e-5) * m.ln_g + m.ln_b


# --------------------------------------------------------------------------

if __name__ == "__main__":
    n_head, d_model, d_head = 8, 128, 16
    qlen, mlen, bsz = 32, 96, 2
    klen = qlen + mlen

    key = jax.random.PRNGKey(0)
    kw, kr, km, kp, kb1, kb2 = jax.random.split(key, 6)
    w = jax.random.normal(kw, (qlen, bsz, d_model), jnp.float32)
    r = jax.random.normal(kr, (klen, 1, d_model), jnp.float32)
    mems = jax.random.normal(km, (mlen, bsz, d_model), jnp.float32)
    r_w_bias = 0.02 * jax.random.normal(kb1, (n_head, d_head), jnp.float32)
    r_r_bias = 0.02 * jax.random.normal(kb2, (n_head, d_head), jnp.float32)
    # standard Transformer-XL causal mask with memory: 1 = masked
    attn_mask = jnp.triu(jnp.ones((qlen, klen), jnp.float32), k=1 + mlen)

    attn = RelPartialLearnableMultiHeadAttnPallas(
        n_head, d_model, d_head, dropout=0.0, dropatt=0.0,
        pre_lnorm=False, key=kp)

    out = attn(w, r, r_w_bias, r_r_bias, attn_mask=attn_mask, mems=mems)
    out = jax.block_until_ready(out)
    assert out.shape == (qlen, bsz, d_model)

    ref = reference_forward(attn, w, r, r_w_bias, r_r_bias, attn_mask, mems)
    max_err = float(jnp.max(jnp.abs(out - ref)))
    # bf16 MXU operands + approx reciprocal vs. f32 reference
    assert max_err < 2e-2, max_err

    print("KERNEL_OK")
</pallas_src>

<mosaic_0001>
module attributes {stable_mosaic.version = 11 : i64} {
  func.func @_matmul_kernel(%arg0: i32, %arg1: i32, %arg2: i32, %arg3: memref<256x128xf32, #tpu.memory_space<vmem>>, %arg4: memref<128x256xbf16, #tpu.memory_space<vmem>>, %arg5: memref<256x256xf32, #tpu.memory_space<vmem>>, %arg6: memref<256x256xf32, #tpu.memory_space<vmem>>) attributes {dimension_semantics = [#tpu.dimension_semantics<parallel>, #tpu.dimension_semantics<parallel>, #tpu.dimension_semantics<arbitrary>], iteration_bounds = array<i64: 1, 1, 1>, scalar_prefetch = 0 : i64, scratch_operands = 1 : i64, tpu.core_type = #tpu.core_type<tc>, window_params = [{transform_indices = @transform_0, window_bounds = array<i64: 256, 128>}, {transform_indices = @transform_1, window_bounds = array<i64: 128, 256>}, {transform_indices = @transform_2, window_bounds = array<i64: 256, 256>}]} {
    %c0_i32 = arith.constant 0 : i32
    %0 = arith.cmpi eq, %arg2, %c0_i32 : i32
    %1 = arith.extui %0 : i1 to i32
    %c0_i32_0 = arith.constant 0 : i32
    %2 = arith.cmpi ne, %1, %c0_i32_0 : i32
    scf.if %2 {
      %cst_10 = arith.constant 0.000000e+00 : f32
      %13 = vector.broadcast %cst_10 : f32 to vector<256x256xf32>
      %c0_11 = arith.constant 0 : index
      %c0_12 = arith.constant 0 : index
      %14 = vector.load %arg6[%c0_11, %c0_12] : memref<256x256xf32, #tpu.memory_space<vmem>>, vector<256x256xf32>
      tpu.vector_store %arg6[%c0_11, %c0_12], %13 {strides = array<i32>} : memref<256x256xf32, #tpu.memory_space<vmem>>, vector<256x256xf32>,
    } else {
    }
    %c0 = arith.constant 0 : index
    %c0_1 = arith.constant 0 : index
    %3 = vector.load %arg6[%c0, %c0_1] : memref<256x256xf32, #tpu.memory_space<vmem>>, vector<256x256xf32>
    %c0_2 = arith.constant 0 : index
    %c0_3 = arith.constant 0 : index
    %4 = vector.load %arg3[%c0_2, %c0_3] : memref<256x128xf32, #tpu.memory_space<vmem>>, vector<256x128xf32>
    %5 = arith.truncf %4 : vector<256x128xf32> to vector<256x128xbf16>
    %c0_4 = arith.constant 0 : index
    %c0_5 = arith.constant 0 : index
    %6 = vector.load %arg4[%c0_4, %c0_5] : memref<128x256xbf16, #tpu.memory_space<vmem>>, vector<128x256xbf16>
    %cst = arith.constant dense<0.000000e+00> : vector<256x256xf32>
    %7 = tpu.matmul %5, %6, %cst {dimension_numbers = #tpu.dot_dimension_numbers<[1], [0], [0], [1], [0, 0, 1, 1], [], []>} : vector<256x128xbf16>, vector<128x256xbf16>, vector<256x256xf32> -> vector<256x256xf32>
    %8 = arith.addf %3, %7 : vector<256x256xf32>
    %c0_6 = arith.constant 0 : index
    %c0_7 = arith.constant 0 : index
    %9 = vector.load %arg6[%c0_6, %c0_7] : memref<256x256xf32, #tpu.memory_space<vmem>>, vector<256x256xf32>
    tpu.vector_store %arg6[%c0_6, %c0_7], %8 {strides = array<i32>} : memref<256x256xf32, #tpu.memory_space<vmem>>, vector<256x256xf32>,
    %c0_i32_8 = arith.constant 0 : i32
    %10 = arith.cmpi eq, %arg2, %c0_i32_8 : i32
    %11 = arith.extui %10 : i1 to i32
    %c0_i32_9 = arith.constant 0 : i32
    %12 = arith.cmpi ne, %11, %c0_i32_9 : i32
    scf.if %12 {
      %c0_10 = arith.constant 0 : index
      %c0_11 = arith.constant 0 : index
      %13 = vector.load %arg6[%c0_10, %c0_11] : memref<256x256xf32, #tpu.memory_space<vmem>>, vector<256x256xf32>
      %c0_12 = arith.constant 0 : index
      %c0_13 = arith.constant 0 : index
      %14 = vector.load %arg5[%c0_12, %c0_13] : memref<256x256xf32, #tpu.memory_space<vmem>>, vector<256x256xf32>
      tpu.vector_store %arg5[%c0_12, %c0_13], %13 {strides = array<i32>} : memref<256x256xf32, #tpu.memory_space<vmem>>, vector<256x256xf32>,
    } else {
    }
    return
  }
  func.func @transform_0(%arg0: i32, %arg1: i32, %arg2: i32) -> (i32, i32) {
    %c0_i32 = arith.constant 0 : i32
    return %arg0, %arg2 : i32, i32
  }
  func.func @transform_1(%arg0: i32, %arg1: i32, %arg2: i32) -> (i32, i32) {
    %c0_i32 = arith.constant 0 : i32
    return %arg2, %arg1 : i32, i32
  }
  func.func @transform_2(%arg0: i32, %arg1: i32, %arg2: i32) -> (i32, i32) {
    %c0_i32 = arith.constant 0 : i32
    return %arg0, %arg1 : i32, i32
  }
}

</mosaic_0001>

<bundles_post_ra>
// kernel: tpu_custom_call.1
= control target key start
LH: loop header
LB: loop body
LE: loop exit
PB: predicated region body
PF: predicated region fallthrough
CT: control target
= control target key end

     0   :  { %7 = vsyncpa [#allocation4], 0  ;;  %s989_s0 = inlined_call_operand.hbm [shape: f32[256,128], index: 0, kind: input, shape index: {}]   ;;  %s990_s1 = inlined_call_operand.hbm [shape: bf16[128,256], index: 1, kind: input, shape index: {}]   ;;  %s991_s2 = inlined_call_operand.hbm [shape: f32[256,256], index: 2, kind: output, shape index: {}]  }
   0x1   :  { %8 = vsyncpa [#allocation7], 0 }
   0x2   :  { %9 = vsyncpa [#allocation5], 0  ;;  %s14_s11 = sshll.u32 %s989_s0, 4  ;;  %s958_s12 = smov [#allocation3]   ;;  %s15_s11 = int_to_ptr.hbm [resolvable:$true] %s14_s11 }
   0x3   :  { %s16_s13 = sshll.u32 %s958_s12, 4  ;;  %s27_s16 = sshll.u32 %s990_s1, 4  ;;  %s17_s13 = int_to_ptr.vmem [resolvable:$true] %s16_s13  ;;  %s28_s16 = int_to_ptr.hbm [resolvable:$true] %s27_s16 }
   0x4   :  { %s959_s17 = smov 128   ;;  %s960_s18 = smov 8  }
   0x5   :  { %22 = dma.hbm_to_vmem [thread:$0]  %s15_s11, 4096, %s17_s13, [#allocation4], %s959_s17, %s959_s17, %s960_s18  }
   0x6   :  { %s961_s19 = smov [#allocation6]  }
   0x7   :  { %s29_s20 = sshll.u32 %s961_s19, 4  ;;  %s30_s20 = int_to_ptr.vmem [resolvable:$true] %s29_s20 }
   0x8   :  { %35 = dma.hbm_to_vmem [thread:$0]  %s28_s16, 2048, %s30_s20, [#allocation7], %s959_s17, %s959_s17, %s960_s18  }
   0x9   :  { %952 = dma.done.wait [#allocation4], 4096  }
   0xa   :  { %953 = vsyncadd [#allocation4], 4294963200 }
   0xb   :  { %954 = dma.done.wait [#allocation7], 2048  }
   0xc   :  { %955 = vsyncadd [#allocation7], 4294965248  ;;  %v835_v0 = vld [vmem:[#allocation6 + $0x70] sm:$0xf]  ;;  %v856_v1 = vld [vmem:[#allocation6 + $0x74] sm:$0xf0] }
   0xd   :  { %v855_v2 = vld [vmem:[#allocation6 + $0x74] sm:$0xf]  ;;  %v836_v3 = vor.u32 %v856_v1, %v835_v0  ;;  %v837_v4 = vld [vmem:[#allocation6 + $0x78] sm:$0xf0]  ;;  %v827_v5 = vld [vmem:[#allocation6 + $0x60] sm:$0xf] }
   0xe   :  { %v854_v6 = vld [vmem:[#allocation6 + $0x64] sm:$0xf0]  ;;  %v840_v7 = vor.u32 %v855_v2, %v837_v4  ;;  %v853_v8 = vld [vmem:[#allocation6 + $0x64] sm:$0xf]  ;;  %v829_v9 = vld [vmem:[#allocation6 + $0x68] sm:$0xf0] }
   0xf   :  { %320 = vmatpush.bf16.msra.mxu0 %v836_v3  ;;  %857 = vmatpush.bf16.msra.mxu2 %v836_v3  ;;  %v828_v10 = vor.u32 %v854_v6, %v827_v5  ;;  %v832_v11 = vor.u32 %v853_v8, %v829_v9  ;;  %v819_v12 = vld [vmem:[#allocation6 + $0x50] sm:$0xf]  ;;  %v852_v13 = vld [vmem:[#allocation6 + $0x54] sm:$0xf0]  ;;  %v851_v14 = vld [vmem:[#allocation6 + $0x54] sm:$0xf] }
  0x10   :  { %409 = vmatpush.bf16.msra.mxu1 %v840_v7  ;;  %865 = vmatpush.bf16.msra.mxu3 %v840_v7  ;;  %v821_v15 = vld [vmem:[#allocation6 + $0x58] sm:$0xf0]  ;;  %v820_v16 = vor.u32 %v852_v13, %v819_v12  ;;  %v811_v18 = vld [vmem:[#allocation6 + $0x40] sm:$0xf]  ;;  %v850_v19 = vld [vmem:[#allocation6 + $0x44] sm:$0xf0] }
  0x11   :  { %v824_v17 = vor.u32 %v851_v14, %v821_v15  ;;  %v849_v20 = vld [vmem:[#allocation6 + $0x44] sm:$0xf]  ;;  %v813_v21 = vld [vmem:[#allocation6 + $0x48] sm:$0xf0]  ;;  %v812_v22 = vor.u32 %v850_v19, %v811_v18  ;;  %v803_v24 = vld [vmem:[#allocation6 + $0x30] sm:$0xf] }
  0x12   :  { %v816_v23 = vor.u32 %v849_v20, %v813_v21  ;;  %v848_v25 = vld [vmem:[#allocation6 + $0x34] sm:$0xf0]  ;;  %v847_v26 = vld [vmem:[#allocation6 + $0x34] sm:$0xf]  ;;  %v805_v27 = vld [vmem:[#allocation6 + $0x38] sm:$0xf0] }
  0x13   :  { %321 = vmatpush.bf16.msra.mxu0 %v828_v10  ;;  %858 = vmatpush.bf16.msra.mxu2 %v828_v10  ;;  %v804_v28 = vor.u32 %v848_v25, %v803_v24  ;;  %v808_v29 = vor.u32 %v847_v26, %v805_v27  ;;  %v795_v30 = vld [vmem:[#allocation6 + $0x20] sm:$0xf]  ;;  %v846_v31 = vld [vmem:[#allocation6 + $0x24] sm:$0xf0]  ;;  %v845_v32 = vld [vmem:[#allocation6 + $0x24] sm:$0xf] }
  0x14   :  { %410 = vmatpush.bf16.msra.mxu1 %v832_v11  ;;  %866 = vmatpush.bf16.msra.mxu3 %v832_v11  ;;  %v797_v33 = vld [vmem:[#allocation6 + $0x28] sm:$0xf0]  ;;  %v796_v34 = vor.u32 %v846_v31, %v795_v30  ;;  %v787_v36 = vld [vmem:[#allocation6 + $0x10] sm:$0xf]  ;;  %v844_v37 = vld [vmem:[#allocation6 + $0x14] sm:$0xf0] }
  0x15   :  { %v800_v35 = vor.u32 %v845_v32, %v797_v33  ;;  %v843_v38 = vld [vmem:[#allocation6 + $0x14] sm:$0xf]  ;;  %v789_v39 = vld [vmem:[#allocation6 + $0x18] sm:$0xf0]  ;;  %v788_v40 = vor.u32 %v844_v37, %v787_v36  ;;  %v779_v42 = vld [vmem:[#allocation6] sm:$0xf] }
  0x16   :  { %v792_v41 = vor.u32 %v843_v38, %v789_v39  ;;  %v842_v43 = vld [vmem:[#allocation6 + $0x4] sm:$0xf0]  ;;  %v841_v44 = vld [vmem:[#allocation6 + $0x4] sm:$0xf]  ;;  %v781_v45 = vld [vmem:[#allocation6 + $0x8] sm:$0xf0] }
  0x17   :  { %322 = vmatpush.bf16.msra.mxu0 %v820_v16  ;;  %859 = vmatpush.bf16.msra.mxu2 %v820_v16  ;;  %v176_v46 = vld [vmem:[#allocation3] sm:$0xff]  ;;  %v780_v47 = vor.u32 %v842_v43, %v779_v42  ;;  %v177_v48 = vld [vmem:[#allocation3 + $0x8] sm:$0xff]  ;;  %v784_v51 = vor.u32 %v841_v44, %v781_v45  ;;  %v178_v54 = vld [vmem:[#allocation3 + $0x10] sm:$0xff]  ;;  %s962_s0 = smov [#allocation8]   ;;  %s763_s23 = sshll.u32 %s991_s2, 4  ;;  %s764_s23 = int_to_ptr.hbm [resolvable:$true] %s763_s23 }
  0x18   :  { %411 = vmatpush.bf16.msra.mxu1 %v824_v17  ;;  %867 = vmatpush.bf16.msra.mxu3 %v824_v17  ;;  %v192_v49 = vld [vmem:[#allocation3 + $0x80] sm:$0xff]  ;;  %v193_v50 = vld [vmem:[#allocation3 + $0x88] sm:$0xff]  ;;  %v208_v52 = vpack.c.bf16 %v177_v48, %v176_v46  ;;  %v179_v55 = vld [vmem:[#allocation3 + $0x18] sm:$0xff]  ;;  %s761_s1 = sshll.u32 %s962_s0, 4  ;;  %s963_s24 = smov 256   ;;  %s762_s1 = int_to_ptr.vmem [resolvable:$true] %s761_s1 }
  0x19   :  { %v216_v53 = vpack.c.bf16 %v193_v50, %v192_v49  ;;  %v194_v56 = vld [vmem:[#allocation3 + $0x90] sm:$0xff]  ;;  %v195_v57 = vld [vmem:[#allocation3 + $0x98] sm:$0xff]  ;;  %v209_v58 = vpack.c.bf16 %v179_v55, %v178_v54  ;;  %v180_v60 = vld [vmem:[#allocation3 + $0x20] sm:$0xff]  ;;  %s964_s25 = smov 16  }
  0x1a   :  { %v217_v59 = vpack.c.bf16 %v195_v57, %v194_v56  ;;  %v181_v61 = vld [vmem:[#allocation3 + $0x28] sm:$0xff]  ;;  %v196_v62 = vld [vmem:[#allocation3 + $0xa0] sm:$0xff]  ;;  %v182_v2 = vld [vmem:[#allocation3 + $0x30] sm:$0xff] }
  0x1b   :  { %323 = vmatpush.bf16.msra.mxu0 %v812_v22  ;;  %860 = vmatpush.bf16.msra.mxu2 %v812_v22  ;;  %v197_v63 = vld [vmem:[#allocation3 + $0xa8] sm:$0xff]  ;;  %v210_v0 = vpack.c.bf16 %v181_v61, %v180_v60  ;;  %v183_v3 = vld [vmem:[#allocation3 + $0x38] sm:$0xff]  ;;  %v198_v4 = vld [vmem:[#allocation3 + $0xb0] sm:$0xff] }
  0x1c   :  { %412 = vmatpush.bf16.msra.mxu1 %v816_v23  ;;  %868 = vmatpush.bf16.msra.mxu3 %v816_v23  ;;  %v218_v1 = vpack.c.bf16 %v197_v63, %v196_v62  ;;  %v199_v5 = vld [vmem:[#allocation3 + $0xb8] sm:$0xff]  ;;  %v211_v6 = vpack.c.bf16 %v183_v3, %v182_v2  ;;  %v184_v8 = vld [vmem:[#allocation3 + $0x40] sm:$0xff]  ;;  %v185_v9 = vld [vmem:[#allocation3 + $0x48] sm:$0xff] }
  0x1d   :  { %v219_v7 = vpack.c.bf16 %v199_v5, %v198_v4  ;;  %v200_v10 = vld [vmem:[#allocation3 + $0xc0] sm:$0xff]  ;;  %v201_v11 = vld [vmem:[#allocation3 + $0xc8] sm:$0xff]  ;;  %v212_v12 = vpack.c.bf16 %v185_v9, %v184_v8  ;;  %v186_v14 = vld [vmem:[#allocation3 + $0x50] sm:$0xff] }
  0x1e   :  { %v220_v13 = vpack.c.bf16 %v201_v11, %v200_v10  ;;  %v187_v15 = vld [vmem:[#allocation3 + $0x58] sm:$0xff]  ;;  %v202_v16 = vld [vmem:[#allocation3 + $0xd0] sm:$0xff]  ;;  %v188_v20 = vld [vmem:[#allocation3 + $0x60] sm:$0xff] }
  0x1f   :  { %324 = vmatpush.bf16.msra.mxu0 %v804_v28  ;;  %861 = vmatpush.bf16.msra.mxu2 %v804_v28  ;;  %v203_v17 = vld [vmem:[#allocation3 + $0xd8] sm:$0xff]  ;;  %v213_v18 = vpack.c.bf16 %v187_v15, %v186_v14  ;;  %v189_v21 = vld [vmem:[#allocation3 + $0x68] sm:$0xff]  ;;  %v204_v22 = vld [vmem:[#allocation3 + $0xe0] sm:$0xff] }
  0x20   :  { %413 = vmatpush.bf16.msra.mxu1 %v808_v29  ;;  %869 = vmatpush.bf16.msra.mxu3 %v808_v29  ;;  %v221_v19 = vpack.c.bf16 %v203_v17, %v202_v16  ;;  %v205_v23 = vld [vmem:[#allocation3 + $0xe8] sm:$0xff]  ;;  %v214_v24 = vpack.c.bf16 %v189_v21, %v188_v20  ;;  %v190_v26 = vld [vmem:[#allocation3 + $0x70] sm:$0xff]  ;;  %v191_v27 = vld [vmem:[#allocation3 + $0x78] sm:$0xff] }
  0x21   :  { %v222_v25 = vpack.c.bf16 %v205_v23, %v204_v22  ;;  %v206_v28 = vld [vmem:[#allocation3 + $0xf0] sm:$0xff]  ;;  %v207_v29 = vld [vmem:[#allocation3 + $0xf8] sm:$0xff]  ;;  %v215_v30 = vpack.c.bf16 %v191_v27, %v190_v26 }
  0x22   :  { %v223_v31 = vpack.c.bf16 %v207_v29, %v206_v28 }
  0x23   :  { %325 = vmatpush.bf16.msra.mxu0 %v796_v34  ;;  %862 = vmatpush.bf16.msra.mxu2 %v796_v34 }
  0x24   :  { %414 = vmatpush.bf16.msra.mxu1 %v800_v35  ;;  %870 = vmatpush.bf16.msra.mxu3 %v800_v35 }
  0x27   :  { %326 = vmatpush.bf16.msra.mxu0 %v788_v40  ;;  %863 = vmatpush.bf16.msra.mxu2 %v788_v40 }
  0x28   :  { %415 = vmatpush.bf16.msra.mxu1 %v792_v41  ;;  %871 = vmatpush.bf16.msra.mxu3 %v792_v41 }
  0x2b   :  { %327 = vmatpush.bf16.msra.mxu0 %v780_v47  ;;  %864 = vmatpush.bf16.msra.mxu2 %v780_v47 }
  0x2c   :  { %416 = vmatpush.bf16.msra.mxu1 %v784_v51  ;;  %872 = vmatpush.bf16.msra.mxu3 %v784_v51 }
  0x2e   :  { %328 = vmatmul.bf16.vlgmr.msra.gmra.mxu0 %v208_v52  ;;  %368 = vmatmul.bf16.vlgmr.msra.gmra.mxu2 %v216_v53 }
  0x2f   :  { %417 = vmatmul.bf16.vlgmr.msra.gmra.mxu1 %v208_v52  ;;  %457 = vmatmul.bf16.vlgmr.msra.gmra.mxu3 %v216_v53 }
  0x3e   :  { %333 = vmatmul.bf16.gmra.mxu0 %v209_v58  ;;  %373 = vmatmul.bf16.gmra.mxu2 %v217_v59 }
  0x3f   :  { %422 = vmatmul.bf16.gmra.mxu1 %v209_v58  ;;  %462 = vmatmul.bf16.gmra.mxu3 %v217_v59 }
  0x4e   :  { %338 = vmatmul.bf16.gmra.mxu0 %v210_v0  ;;  %378 = vmatmul.bf16.gmra.mxu2 %v218_v1 }
  0x4f   :  { %427 = vmatmul.bf16.gmra.mxu1 %v210_v0  ;;  %467 = vmatmul.bf16.gmra.mxu3 %v218_v1 }
  0x5e   :  { %343 = vmatmul.bf16.gmra.mxu0 %v211_v6  ;;  %383 = vmatmul.bf16.gmra.mxu2 %v219_v7 }
  0x5f   :  { %432 = vmatmul.bf16.gmra.mxu1 %v211_v6  ;;  %472 = vmatmul.bf16.gmra.mxu3 %v219_v7 }
  0x6e   :  { %348 = vmatmul.bf16.gmra.mxu0 %v212_v12  ;;  %388 = vmatmul.bf16.gmra.mxu2 %v220_v13 }
  0x6f   :  { %437 = vmatmul.bf16.gmra.mxu1 %v212_v12  ;;  %477 = vmatmul.bf16.gmra.mxu3 %v220_v13 }
  0x7e   :  { %353 = vmatmul.bf16.gmra.mxu0 %v213_v18  ;;  %393 = vmatmul.bf16.gmra.mxu2 %v221_v19 }
  0x7f   :  { %442 = vmatmul.bf16.gmra.mxu1 %v213_v18  ;;  %482 = vmatmul.bf16.gmra.mxu3 %v221_v19 }
  0x8e   :  { %358 = vmatmul.bf16.gmra.mxu0 %v214_v24  ;;  %398 = vmatmul.bf16.gmra.mxu2 %v222_v25 }
  0x8f   :  { %447 = vmatmul.bf16.gmra.mxu1 %v214_v24  ;;  %487 = vmatmul.bf16.gmra.mxu3 %v222_v25 }
  0x9e   :  { %363 = vmatmul.bf16.gmra.mxu0 %v215_v30  ;;  %403 = vmatmul.bf16.gmra.mxu2 %v223_v31 }
  0x9f   :  { %452 = vmatmul.bf16.gmra.mxu1 %v215_v30  ;;  %492 = vmatmul.bf16.gmra.mxu3 %v223_v31 }
  0xab   :  { %v329_v32 = vpop.f32.mrf.mxu0 }
  0xac   :  { %693 = vst [vmem:[#allocation8] sm:$0xff] %v329_v32  ;;  %v418_v33 = vpop.f32.mrf.mxu1 }
  0xad   :  { %694 = vst [vmem:[#allocation8 + $0x8] sm:$0xff] %v418_v33 }
  0xb1   :  { %v369_v34 = vpop.f32.mrf.mxu2 }
  0xb2   :  { %725 = vst [vmem:[#allocation8 + $0x100] sm:$0xff] %v369_v34  ;;  %v458_v35 = vpop.f32.mrf.mxu3 }
  0xb3   :  { %726 = vst [vmem:[#allocation8 + $0x108] sm:$0xff] %v458_v35  ;;  %v331_v36 = vpop.f32.mrf.mxu0 }
  0xb4   :  { %695 = vst [vmem:[#allocation8 + $0x10] sm:$0xff] %v331_v36  ;;  %v420_v37 = vpop.f32.mrf.mxu1 }
  0xb5   :  { %696 = vst [vmem:[#allocation8 + $0x18] sm:$0xff] %v420_v37 }
  0xb9   :  { %v371_v38 = vpop.f32.mrf.mxu2 }
  0xba   :  { %727 = vst [vmem:[#allocation8 + $0x110] sm:$0xff] %v371_v38  ;;  %v460_v39 = vpop.f32.mrf.mxu3 }
  0xbb   :  { %728 = vst [vmem:[#allocation8 + $0x118] sm:$0xff] %v460_v39  ;;  %v334_v40 = vpop.f32.mrf.mxu0 }
  0xbc   :  { %697 = vst [vmem:[#allocation8 + $0x20] sm:$0xff] %v334_v40  ;;  %v423_v41 = vpop.f32.mrf.mxu1 }
  0xbd   :  { %698 = vst [vmem:[#allocation8 + $0x28] sm:$0xff] %v423_v41 }
  0xc1   :  { %v374_v42 = vpop.f32.mrf.mxu2 }
  0xc2   :  { %729 = vst [vmem:[#allocation8 + $0x120] sm:$0xff] %v374_v42  ;;  %v463_v43 = vpop.f32.mrf.mxu3 }
  0xc3   :  { %730 = vst [vmem:[#allocation8 + $0x128] sm:$0xff] %v463_v43  ;;  %v336_v44 = vpop.f32.mrf.mxu0 }
  0xc4   :  { %699 = vst [vmem:[#allocation8 + $0x30] sm:$0xff] %v336_v44  ;;  %v425_v45 = vpop.f32.mrf.mxu1 }
  0xc5   :  { %700 = vst [vmem:[#allocation8 + $0x38] sm:$0xff] %v425_v45 }
  0xc9   :  { %v376_v46 = vpop.f32.mrf.mxu2 }
  0xca   :  { %731 = vst [vmem:[#allocation8 + $0x130] sm:$0xff] %v376_v46  ;;  %v465_v47 = vpop.f32.mrf.mxu3 }
  0xcb   :  { %732 = vst [vmem:[#allocation8 + $0x138] sm:$0xff] %v465_v47  ;;  %v339_v48 = vpop.f32.mrf.mxu0 }
  0xcc   :  { %701 = vst [vmem:[#allocation8 + $0x40] sm:$0xff] %v339_v48  ;;  %v428_v49 = vpop.f32.mrf.mxu1 }
  0xcd   :  { %702 = vst [vmem:[#allocation8 + $0x48] sm:$0xff] %v428_v49 }
  0xd1   :  { %v379_v50 = vpop.f32.mrf.mxu2 }
  0xd2   :  { %733 = vst [vmem:[#allocation8 + $0x140] sm:$0xff] %v379_v50  ;;  %v468_v51 = vpop.f32.mrf.mxu3 }
  0xd3   :  { %734 = vst [vmem:[#allocation8 + $0x148] sm:$0xff] %v468_v51  ;;  %v341_v52 = vpop.f32.mrf.mxu0 }
  0xd4   :  { %703 = vst [vmem:[#allocation8 + $0x50] sm:$0xff] %v341_v52  ;;  %v430_v53 = vpop.f32.mrf.mxu1 }
  0xd5   :  { %704 = vst [vmem:[#allocation8 + $0x58] sm:$0xff] %v430_v53 }
  0xd9   :  { %v381_v54 = vpop.f32.mrf.mxu2 }
  0xda   :  { %735 = vst [vmem:[#allocation8 + $0x150] sm:$0xff] %v381_v54  ;;  %v470_v55 = vpop.f32.mrf.mxu3 }
  0xdb   :  { %736 = vst [vmem:[#allocation8 + $0x158] sm:$0xff] %v470_v55  ;;  %v344_v56 = vpop.f32.mrf.mxu0 }
  0xdc   :  { %705 = vst [vmem:[#allocation8 + $0x60] sm:$0xff] %v344_v56  ;;  %v433_v57 = vpop.f32.mrf.mxu1 }
  0xdd   :  { %706 = vst [vmem:[#allocation8 + $0x68] sm:$0xff] %v433_v57 }
  0xe1   :  { %v384_v58 = vpop.f32.mrf.mxu2 }
  0xe2   :  { %737 = vst [vmem:[#allocation8 + $0x160] sm:$0xff] %v384_v58  ;;  %v473_v59 = vpop.f32.mrf.mxu3 }
  0xe3   :  { %738 = vst [vmem:[#allocation8 + $0x168] sm:$0xff] %v473_v59  ;;  %v346_v60 = vpop.f32.mrf.mxu0 }
  0xe4   :  { %707 = vst [vmem:[#allocation8 + $0x70] sm:$0xff] %v346_v60  ;;  %v435_v61 = vpop.f32.mrf.mxu1 }
  0xe5   :  { %708 = vst [vmem:[#allocation8 + $0x78] sm:$0xff] %v435_v61 }
  0xe9   :  { %v386_v62 = vpop.f32.mrf.mxu2 }
  0xea   :  { %739 = vst [vmem:[#allocation8 + $0x170] sm:$0xff] %v386_v62  ;;  %v475_v63 = vpop.f32.mrf.mxu3 }
  0xeb   :  { %740 = vst [vmem:[#allocation8 + $0x178] sm:$0xff] %v475_v63  ;;  %v349_v0 = vpop.f32.mrf.mxu0 }
  0xec   :  { %709 = vst [vmem:[#allocation8 + $0x80] sm:$0xff] %v349_v0  ;;  %v438_v1 = vpop.f32.mrf.mxu1 }
  0xed   :  { %710 = vst [vmem:[#allocation8 + $0x88] sm:$0xff] %v438_v1 }
  0xf1   :  { %v389_v2 = vpop.f32.mrf.mxu2 }
  0xf2   :  { %741 = vst [vmem:[#allocation8 + $0x180] sm:$0xff] %v389_v2  ;;  %v478_v3 = vpop.f32.mrf.mxu3 }
  0xf3   :  { %742 = vst [vmem:[#allocation8 + $0x188] sm:$0xff] %v478_v3  ;;  %v351_v4 = vpop.f32.mrf.mxu0 }
  0xf4   :  { %711 = vst [vmem:[#allocation8 + $0x90] sm:$0xff] %v351_v4  ;;  %v440_v5 = vpop.f32.mrf.mxu1 }
  0xf5   :  { %712 = vst [vmem:[#allocation8 + $0x98] sm:$0xff] %v440_v5 }
  0xf9   :  { %v391_v6 = vpop.f32.mrf.mxu2 }
  0xfa   :  { %743 = vst [vmem:[#allocation8 + $0x190] sm:$0xff] %v391_v6  ;;  %v480_v7 = vpop.f32.mrf.mxu3 }
  0xfb   :  { %744 = vst [vmem:[#allocation8 + $0x198] sm:$0xff] %v480_v7  ;;  %v354_v8 = vpop.f32.mrf.mxu0 }
  0xfc   :  { %713 = vst [vmem:[#allocation8 + $0xa0] sm:$0xff] %v354_v8  ;;  %v443_v9 = vpop.f32.mrf.mxu1 }
  0xfd   :  { %714 = vst [vmem:[#allocation8 + $0xa8] sm:$0xff] %v443_v9 }
 0x101   :  { %v394_v10 = vpop.f32.mrf.mxu2 }
 0x102   :  { %745 = vst [vmem:[#allocation8 + $0x1a0] sm:$0xff] %v394_v10  ;;  %v483_v11 = vpop.f32.mrf.mxu3 }
 0x103   :  { %746 = vst [vmem:[#allocation8 + $0x1a8] sm:$0xff] %v483_v11  ;;  %v356_v12 = vpop.f32.mrf.mxu0 }
 0x104   :  { %715 = vst [vmem:[#allocation8 + $0xb0] sm:$0xff] %v356_v12  ;;  %v445_v13 = vpop.f32.mrf.mxu1 }
 0x105   :  { %716 = vst [vmem:[#allocation8 + $0xb8] sm:$0xff] %v445_v13 }
 0x109   :  { %v396_v14 = vpop.f32.mrf.mxu2 }
 0x10a   :  { %747 = vst [vmem:[#allocation8 + $0x1b0] sm:$0xff] %v396_v14  ;;  %v485_v15 = vpop.f32.mrf.mxu3 }
 0x10b   :  { %748 = vst [vmem:[#allocation8 + $0x1b8] sm:$0xff] %v485_v15  ;;  %v359_v16 = vpop.f32.mrf.mxu0 }
 0x10c   :  { %717 = vst [vmem:[#allocation8 + $0xc0] sm:$0xff] %v359_v16  ;;  %v448_v17 = vpop.f32.mrf.mxu1 }
 0x10d   :  { %718 = vst [vmem:[#allocation8 + $0xc8] sm:$0xff] %v448_v17 }
 0x111   :  { %v399_v18 = vpop.f32.mrf.mxu2 }
 0x112   :  { %749 = vst [vmem:[#allocation8 + $0x1c0] sm:$0xff] %v399_v18  ;;  %v488_v19 = vpop.f32.mrf.mxu3 }
 0x113   :  { %750 = vst [vmem:[#allocation8 + $0x1c8] sm:$0xff] %v488_v19  ;;  %v361_v20 = vpop.f32.mrf.mxu0 }
 0x114   :  { %719 = vst [vmem:[#allocation8 + $0xd0] sm:$0xff] %v361_v20  ;;  %v450_v21 = vpop.f32.mrf.mxu1 }
 0x115   :  { %720 = vst [vmem:[#allocation8 + $0xd8] sm:$0xff] %v450_v21 }
 0x119   :  { %v401_v22 = vpop.f32.mrf.mxu2 }
 0x11a   :  { %751 = vst [vmem:[#allocation8 + $0x1d0] sm:$0xff] %v401_v22  ;;  %v490_v23 = vpop.f32.mrf.mxu3 }
 0x11b   :  { %752 = vst [vmem:[#allocation8 + $0x1d8] sm:$0xff] %v490_v23  ;;  %v364_v24 = vpop.f32.mrf.mxu0 }
 0x11c   :  { %721 = vst [vmem:[#allocation8 + $0xe0] sm:$0xff] %v364_v24  ;;  %v453_v25 = vpop.f32.mrf.mxu1 }
 0x11d   :  { %722 = vst [vmem:[#allocation8 + $0xe8] sm:$0xff] %v453_v25 }
 0x121   :  { %v404_v26 = vpop.f32.mrf.mxu2 }
 0x122   :  { %753 = vst [vmem:[#allocation8 + $0x1e0] sm:$0xff] %v404_v26  ;;  %v493_v27 = vpop.f32.mrf.mxu3 }
 0x123   :  { %754 = vst [vmem:[#allocation8 + $0x1e8] sm:$0xff] %v493_v27  ;;  %v366_v28 = vpop.f32.mrf.mxu0 }
 0x124   :  { %723 = vst [vmem:[#allocation8 + $0xf0] sm:$0xff] %v366_v28  ;;  %v455_v29 = vpop.f32.mrf.mxu1 }
 0x125   :  { %724 = vst [vmem:[#allocation8 + $0xf8] sm:$0xff] %v455_v29 }
 0x129   :  { %v406_v30 = vpop.f32.mrf.mxu2 }
 0x12a   :  { %755 = vst [vmem:[#allocation8 + $0x1f0] sm:$0xff] %v406_v30  ;;  %v495_v31 = vpop.f32.mrf.mxu3 }
 0x12b   :  { %756 = vst [vmem:[#allocation8 + $0x1f8] sm:$0xff] %v495_v31 }
 0x12c   :  { %769 = dma.vmem_to_hbm [thread:$0]  %s762_s1, 8192, %s764_s23, [#allocation5], %s963_s24, %s963_s24, %s964_s25  }
 0x12d   :  { %956 = dma.done.wait [#allocation5], 8192  }
 0x12e   :  { %957 = vsyncadd [#allocation5], 4294959104 }
 0x12f   :  { %774 = vsyncpa [#allocation4], 1 }
 0x130   :  { %775 = vsyncpa [#allocation7], 1 }
 0x131   :  { %776 = vsyncpa [#allocation5], 1 }

</bundles_post_ra>
